<compile_context>
chip_gen: v6e
topology: v6e:2x2x1
jax: 0.10.0
libtpu: 0.0.40
codegen_flags: <defaults>
</compile_context>

<pallas_src>
import math
from functools import partial

import jax
import jax.numpy as jnp
from jax.experimental import pallas as pl
from jax.experimental.pallas import tpu as pltpu


def _gelu_exact(x):
    # nn.GELU() default in PyTorch is the exact erf formulation.
    return x * 0.5 * (1.0 + jax.lax.erf(x * (1.0 / math.sqrt(2.0))))


def cross_block_kernel(n_heads, head_dim, compute_dtype,
                       enc_ref, dec_ref, dech_ref,
                       ln1g_ref, ln1b_ref,
                       kw_ref, kb_ref, vw_ref, vb_ref,
                       pwT_ref, pb_ref,
                       ln2g_ref, ln2b_ref,
                       fc1w_ref, fc1b_ref,
                       fc2w_ref, fc2b_ref,
                       out_ref):
    f32 = jnp.float32
    cdt = compute_dtype                 # bf16 on TPU, f32 elsewhere
    H, hd = n_heads, head_dim
    scale = hd ** -0.5
    eps = 1e-6

    enc = enc_ref[...]                  # (Tk, D)  f32 — full key/value length
    dec = dec_ref[...]                  # (Tq, D)  f32 — query tile (residual stream)
    dech = dech_ref[...]                # (H, Tq, hd) f32 — same data, head-major
    Tk, D = enc.shape
    Tq = dec.shape[0]

    # ---- norm1(dec) -> Q, directly in head-major layout (f32 stats) ----------
    mu = jnp.mean(dec, axis=-1, keepdims=True)                  # (Tq, 1)
    xc = dec - mu
    var = jnp.mean(xc * xc, axis=-1, keepdims=True)
    rstd = jax.lax.rsqrt(var + eps)                             # (Tq, 1)
    qh = (dech - mu[None]) * rstd[None] * ln1g_ref[...] + ln1b_ref[...]
    qh = qh.astype(cdt)                                         # (H, Tq, hd)

    # ---- K / V projections: single full-width matmuls, f32 accumulation ------
    enc_c = enc.astype(cdt)
    k = jnp.dot(enc_c, kw_ref[...], preferred_element_type=f32) + kb_ref[...]
    v = jnp.dot(enc_c, vw_ref[...], preferred_element_type=f32) + vb_ref[...]
    # (Tk, D) -> (D, Tk) -> (H, hd, Tk): one 2-D transpose + leading-dim split.
    khT = k.T.reshape(H, hd, Tk).astype(cdt)
    vhT = v.T.reshape(H, hd, Tk).astype(cdt)

    # ---- batched scaled-dot-product attention over all heads -----------------
    dp = jnp.einsum('hqd,hdk->hqk', qh, khT,
                    preferred_element_type=f32) * scale         # (H, Tq, Tk) f32
    dp = dp - jnp.max(dp, axis=-1, keepdims=True)
    e = jnp.exp(dp)
    inv = pl.reciprocal(jnp.sum(e, axis=-1, keepdims=True), approx=True)
    attn = (e * inv).astype(cdt)                                # (H, Tq, Tk)

    # wavT[h, d, q] = sum_k v[h, k, d] * attn[h, q, k]
    wavT = jnp.einsum('hdk,hqk->hdq', vhT, attn,
                      preferred_element_type=f32)               # (H, hd, Tq) f32
    # head merge is a free leading-dim merge; projection fuses the concat.
    wav_flat = wavT.reshape(D, Tq).astype(cdt)                  # (D, Tq)

    attn_outT = jnp.dot(pwT_ref[...], wav_flat,
                        preferred_element_type=f32)             # (D, Tq)
    x = dec + attn_outT.T + pb_ref[...]                         # residual 1, (Tq, D) f32

    # ---- MLP branch (f32 stats / GELU) ----------------------------------------
    mu2 = jnp.mean(x, axis=-1, keepdims=True)
    xc2 = x - mu2
    var2 = jnp.mean(xc2 * xc2, axis=-1, keepdims=True)
    xn = xc2 * jax.lax.rsqrt(var2 + eps) * ln2g_ref[...] + ln2b_ref[...]

    h1 = jnp.dot(xn.astype(cdt), fc1w_ref[...],
                 preferred_element_type=f32) + fc1b_ref[...]
    h1 = _gelu_exact(h1)
    mlp = jnp.dot(h1.astype(cdt), fc2w_ref[...],
                  preferred_element_type=f32) + fc2b_ref[...]

    out_ref[...] = (x + mlp).astype(out_ref.dtype)              # residual 2
    # All dropouts have p=0.0 (identity at inference), so they are omitted.


def _pick_tile(T):
    for cand in (256, 128, 64, 32, 16, 8):
        if cand <= T and T % cand == 0:
            return cand
    return T


def cross_block(enc, dec, params, n_heads, compute_dtype=None):
    B, T, D = dec.shape
    assert D % n_heads == 0
    hd = D // n_heads

    # bf16 matmul operands on real TPU hardware (MXU-native, f32 accumulation);
    # f32 on other backends (CPU interpreter cannot execute bf16 x bf16 -> f32 dots).
    if compute_dtype is None:
        compute_dtype = jnp.bfloat16 if jax.default_backend() == "tpu" else jnp.float32
    cdt = compute_dtype

    # --- weight preparation (outside the kernel) -------------------------------
    kv_w, kv_b = params['kv_w'], params['kv_b']
    k_w = kv_w[:, :D].astype(cdt)              # split kv into K / V at the wrapper
    v_w = kv_w[:, D:].astype(cdt)
    k_b = kv_b[:, :D]
    v_b = kv_b[:, D:]
    proj_wT = params['proj_w'].T.astype(cdt)   # (D_out, D_in) — used as W @ wav^T
    fc1_w = params['fc1_w'].astype(cdt)
    fc2_w = params['fc2_w'].astype(cdt)
    ln1_g_h = params['ln1_g'].reshape(n_heads, 1, hd)
    ln1_b_h = params['ln1_b'].reshape(n_heads, 1, hd)

    # head-major copy of dec so Q needs no in-kernel relayout
    dec_h = dec.reshape(B, T, n_heads, hd).transpose(0, 2, 1, 3)   # (B, H, T, hd)

    TQ = _pick_tile(T)
    grid = (B, T // TQ)

    weights = [ln1_g_h, ln1_b_h, k_w, k_b, v_w, v_b, proj_wT, params['proj_b'],
               params['ln2_g'], params['ln2_b'],
               fc1_w, params['fc1_b'], fc2_w, params['fc2_b']]

    def const_spec(shape):
        nd = len(shape)
        return pl.BlockSpec(shape, lambda b, t, _nd=nd: (0,) * _nd)

    in_specs = [
        pl.BlockSpec((None, T, D), lambda b, t: (b, 0, 0)),                # enc (full T)
        pl.BlockSpec((None, TQ, D), lambda b, t: (b, t, 0)),               # dec tile
        pl.BlockSpec((None, n_heads, TQ, hd), lambda b, t: (b, 0, t, 0)),  # dec, head-major
    ] + [const_spec(w.shape) for w in weights]

    out_specs = pl.BlockSpec((None, TQ, D), lambda b, t: (b, t, 0))

    # explicit VMEM budget: (double-buffered) weights + activation tiles + slack
    w_bytes = sum(int(w.size) * w.dtype.itemsize for w in weights)
    act_bytes = (T * D + 3 * TQ * D + n_heads * TQ * max(hd, 128)) * 4
    vmem_limit = int(min(64 << 20, max(32 << 20, 2 * w_bytes + 8 * act_bytes + (8 << 20))))
    # TODO(synk): for very large D on v7x (64 MiB VMEM), keep fc1_w/fc2_w in HBM
    # (pl.ANY) with a K-tiled inner loop instead of fully VMEM-resident weights.

    return pl.pallas_call(
        partial(cross_block_kernel, n_heads, hd, cdt),
        out_shape=jax.ShapeDtypeStruct((B, T, D), dec.dtype),
        grid_spec=pltpu.PrefetchScalarGridSpec(
            num_scalar_prefetch=0,
            grid=grid,
            in_specs=in_specs,
            out_specs=out_specs,
        ),
        compiler_params=pltpu.CompilerParams(
            dimension_semantics=("parallel", "parallel"),
            vmem_limit_bytes=vmem_limit),
    )(enc, dec, dec_h, *weights)


def init_params(key, dim, n_heads, mlp_ratio=4.0):
    hidden = int(dim * mlp_ratio)
    ks = jax.random.split(key, 12)
    s = 0.02
    return {
        'ln1_g': jnp.ones((1, dim), jnp.float32)
                 + s * jax.random.normal(ks[0], (1, dim), jnp.float32),
        'ln1_b': s * jax.random.normal(ks[1], (1, dim), jnp.float32),
        'kv_w': s * jax.random.normal(ks[2], (dim, 2 * dim), jnp.float32),
        'kv_b': s * jax.random.normal(ks[3], (1, 2 * dim), jnp.float32),
        'proj_w': s * jax.random.normal(ks[4], (dim, dim), jnp.float32),
        'proj_b': s * jax.random.normal(ks[5], (1, dim), jnp.float32),
        'ln2_g': jnp.ones((1, dim), jnp.float32)
                 + s * jax.random.normal(ks[6], (1, dim), jnp.float32),
        'ln2_b': s * jax.random.normal(ks[7], (1, dim), jnp.float32),
        'fc1_w': s * jax.random.normal(ks[8], (dim, hidden), jnp.float32),
        'fc1_b': s * jax.random.normal(ks[9], (1, hidden), jnp.float32),
        'fc2_w': s * jax.random.normal(ks[10], (hidden, dim), jnp.float32),
        'fc2_b': s * jax.random.normal(ks[11], (1, dim), jnp.float32),
    }


def reference(enc, dec, p, n_heads):
    """Pure-JAX f32 reference mirroring the PyTorch forward exactly."""
    def ln(x, g, b):
        mu = x.mean(-1, keepdims=True)
        var = ((x - mu) ** 2).mean(-1, keepdims=True)
        return (x - mu) / jnp.sqrt(var + 1e-6) * g + b

    B, T, D = dec.shape
    hd = D // n_heads
    q = ln(dec, p['ln1_g'], p['ln1_b'])
    kv = enc @ p['kv_w'] + p['kv_b']
    k, v = kv[..., :D], kv[..., D:]
    qh = q.reshape(B, T, n_heads, hd).transpose(0, 2, 1, 3)
    kh = k.reshape(B, T, n_heads, hd).transpose(0, 2, 1, 3)
    vh = v.reshape(B, T, n_heads, hd).transpose(0, 2, 1, 3)
    dp = jnp.einsum('bhqd,bhkd->bhqk', qh, kh) * (hd ** -0.5)
    attn = jax.nn.softmax(dp, axis=-1)
    wav = jnp.einsum('bhqk,bhkd->bhqd', attn, vh).transpose(0, 2, 1, 3).reshape(B, T, D)
    x = dec + wav @ p['proj_w'] + p['proj_b']
    xn = ln(x, p['ln2_g'], p['ln2_b'])
    h1 = jax.nn.gelu(xn @ p['fc1_w'] + p['fc1_b'], approximate=False)
    return x + h1 @ p['fc2_w'] + p['fc2_b']


if __name__ == "__main__":
    B, T, DIM, N_HEADS = 2, 8, 32, 4

    key = jax.random.PRNGKey(0)
    k_enc, k_dec, k_par = jax.random.split(key, 3)
    enc = jax.random.normal(k_enc, (B, T, DIM), jnp.float32)
    dec = jax.random.normal(k_dec, (B, T, DIM), jnp.float32)
    params = init_params(k_par, DIM, N_HEADS)

    out = jax.block_until_ready(cross_block(enc, dec, params, N_HEADS))
    ref = jax.block_until_ready(reference(enc, dec, params, N_HEADS))

    assert out.shape == (B, T, DIM)
    # bf16 matmul operands on TPU (f32 accumulation) -> loose tolerance vs f32 reference
    assert jnp.allclose(out, ref, atol=2e-2, rtol=2e-2), \
        f"max abs err {jnp.max(jnp.abs(out - ref))}"

    print("KERNEL_OK")
</pallas_src>

<mosaic_0001>
module attributes {stable_mosaic.version = 11 : i64} {
  func.func @cross_block_kernel(%arg0: i32, %arg1: i32, %arg2: memref<1x8x32xf32, #tpu.memory_space<vmem>>, %arg3: memref<1x8x32xf32, #tpu.memory_space<vmem>>, %arg4: memref<1x4x8x8xf32, #tpu.memory_space<vmem>>, %arg5: memref<4x1x8xf32, #tpu.memory_space<vmem>>, %arg6: memref<4x1x8xf32, #tpu.memory_space<vmem>>, %arg7: memref<32x32xf32, #tpu.memory_space<vmem>>, %arg8: memref<1x32xf32, #tpu.memory_space<vmem>>, %arg9: memref<32x32xf32, #tpu.memory_space<vmem>>, %arg10: memref<1x32xf32, #tpu.memory_space<vmem>>, %arg11: memref<32x32xf32, #tpu.memory_space<vmem>>, %arg12: memref<1x32xf32, #tpu.memory_space<vmem>>, %arg13: memref<1x32xf32, #tpu.memory_space<vmem>>, %arg14: memref<1x32xf32, #tpu.memory_space<vmem>>, %arg15: memref<32x128xf32, #tpu.memory_space<vmem>>, %arg16: memref<1x128xf32, #tpu.memory_space<vmem>>, %arg17: memref<128x32xf32, #tpu.memory_space<vmem>>, %arg18: memref<1x32xf32, #tpu.memory_space<vmem>>, %arg19: memref<1x8x32xf32, #tpu.memory_space<vmem>>) attributes {dimension_semantics = [#tpu.dimension_semantics<parallel>, #tpu.dimension_semantics<parallel>], iteration_bounds = array<i64: 2, 1>, scalar_prefetch = 0 : i64, scratch_operands = 0 : i64, tpu.core_type = #tpu.core_type<tc>, window_params = [{transform_indices = @transform_0, window_bounds = array<i64: 1, 8, 32>}, {transform_indices = @transform_1, window_bounds = array<i64: 1, 8, 32>}, {transform_indices = @transform_2, window_bounds = array<i64: 1, 4, 8, 8>}, {pipeline_mode = #tpu.pipeline_mode<synchronous>, transform_indices = @transform_3, window_bounds = array<i64: 4, 1, 8>}, {pipeline_mode = #tpu.pipeline_mode<synchronous>, transform_indices = @transform_4, window_bounds = array<i64: 4, 1, 8>}, {pipeline_mode = #tpu.pipeline_mode<synchronous>, transform_indices = @transform_5, window_bounds = array<i64: 32, 32>}, {pipeline_mode = #tpu.pipeline_mode<synchronous>, transform_indices = @transform_6, window_bounds = array<i64: 1, 32>}, {pipeline_mode = #tpu.pipeline_mode<synchronous>, transform_indices = @transform_7, window_bounds = array<i64: 32, 32>}, {pipeline_mode = #tpu.pipeline_mode<synchronous>, transform_indices = @transform_8, window_bounds = array<i64: 1, 32>}, {pipeline_mode = #tpu.pipeline_mode<synchronous>, transform_indices = @transform_9, window_bounds = array<i64: 32, 32>}, {pipeline_mode = #tpu.pipeline_mode<synchronous>, transform_indices = @transform_10, window_bounds = array<i64: 1, 32>}, {pipeline_mode = #tpu.pipeline_mode<synchronous>, transform_indices = @transform_11, window_bounds = array<i64: 1, 32>}, {pipeline_mode = #tpu.pipeline_mode<synchronous>, transform_indices = @transform_12, window_bounds = array<i64: 1, 32>}, {pipeline_mode = #tpu.pipeline_mode<synchronous>, transform_indices = @transform_13, window_bounds = array<i64: 32, 128>}, {pipeline_mode = #tpu.pipeline_mode<synchronous>, transform_indices = @transform_14, window_bounds = array<i64: 1, 128>}, {pipeline_mode = #tpu.pipeline_mode<synchronous>, transform_indices = @transform_15, window_bounds = array<i64: 128, 32>}, {pipeline_mode = #tpu.pipeline_mode<synchronous>, transform_indices = @transform_16, window_bounds = array<i64: 1, 32>}, {transform_indices = @transform_17, window_bounds = array<i64: 1, 8, 32>}]} {
    %c0 = arith.constant 0 : index
    %c0_0 = arith.constant 0 : index
    %c0_1 = arith.constant 0 : index
    %0 = vector.load %arg2[%c0, %c0_0, %c0_1] : memref<1x8x32xf32, #tpu.memory_space<vmem>>, vector<1x8x32xf32>
    %1 = vector.shape_cast %0 : vector<1x8x32xf32> to vector<8x32xf32>
    %c0_2 = arith.constant 0 : index
    %c0_3 = arith.constant 0 : index
    %c0_4 = arith.constant 0 : index
    %2 = vector.load %arg3[%c0_2, %c0_3, %c0_4] : memref<1x8x32xf32, #tpu.memory_space<vmem>>, vector<1x8x32xf32>
    %3 = vector.shape_cast %2 : vector<1x8x32xf32> to vector<8x32xf32>
    %c0_5 = arith.constant 0 : index
    %c0_6 = arith.constant 0 : index
    %c0_7 = arith.constant 0 : index
    %c0_8 = arith.constant 0 : index
    %4 = vector.load %arg4[%c0_5, %c0_6, %c0_7, %c0_8] : memref<1x4x8x8xf32, #tpu.memory_space<vmem>>, vector<1x4x8x8xf32>
    %5 = vector.shape_cast %4 : vector<1x4x8x8xf32> to vector<4x8x8xf32>
    %cst = arith.constant dense<0.000000e+00> : vector<8xf32>
    %6 = vector.multi_reduction <add>, %3, %cst [1] : vector<8x32xf32> to vector<8xf32>
    %7 = vector.shape_cast %6 : vector<8xf32> to vector<8x1xf32>
    %cst_9 = arith.constant 3.200000e+01 : f32
    %8 = vector.broadcast %cst_9 : f32 to vector<8x1xf32>
    %9 = arith.divf %7, %8 : vector<8x1xf32>
    %10 = vector.broadcast %9 : vector<8x1xf32> to vector<8x32xf32>
    %11 = arith.subf %3, %10 : vector<8x32xf32>
    %12 = arith.mulf %11, %11 : vector<8x32xf32>
    %cst_10 = arith.constant dense<0.000000e+00> : vector<8xf32>
    %13 = vector.multi_reduction <add>, %12, %cst_10 [1] : vector<8x32xf32> to vector<8xf32>
    %14 = vector.shape_cast %13 : vector<8xf32> to vector<8x1xf32>
    %cst_11 = arith.constant 3.200000e+01 : f32
    %15 = vector.broadcast %cst_11 : f32 to vector<8x1xf32>
    %16 = arith.divf %14, %15 : vector<8x1xf32>
    %cst_12 = arith.constant 9.99999997E-7 : f32
    %17 = vector.broadcast %cst_12 : f32 to vector<8x1xf32>
    %18 = arith.addf %16, %17 : vector<8x1xf32>
    %19 = math.rsqrt %18 : vector<8x1xf32>
    %20 = vector.shape_cast %9 : vector<8x1xf32> to vector<1x8x1xf32>
    %21 = vector.broadcast %20 : vector<1x8x1xf32> to vector<4x8x8xf32>
    %22 = arith.subf %5, %21 : vector<4x8x8xf32>
    %23 = vector.shape_cast %19 : vector<8x1xf32> to vector<1x8x1xf32>
    %24 = vector.broadcast %23 : vector<1x8x1xf32> to vector<4x8x8xf32>
    %25 = arith.mulf %22, %24 : vector<4x8x8xf32>
    %c0_13 = arith.constant 0 : index
    %c0_14 = arith.constant 0 : index
    %c0_15 = arith.constant 0 : index
    %26 = vector.load %arg5[%c0_13, %c0_14, %c0_15] : memref<4x1x8xf32, #tpu.memory_space<vmem>>, vector<4x1x8xf32>
    %27 = vector.broadcast %26 : vector<4x1x8xf32> to vector<4x8x8xf32>
    %28 = arith.mulf %25, %27 : vector<4x8x8xf32>
    %c0_16 = arith.constant 0 : index
    %c0_17 = arith.constant 0 : index
    %c0_18 = arith.constant 0 : index
    %29 = vector.load %arg6[%c0_16, %c0_17, %c0_18] : memref<4x1x8xf32, #tpu.memory_space<vmem>>, vector<4x1x8xf32>
    %30 = vector.broadcast %29 : vector<4x1x8xf32> to vector<4x8x8xf32>
    %31 = arith.addf %28, %30 : vector<4x8x8xf32>
    %c0_19 = arith.constant 0 : index
    %c0_20 = arith.constant 0 : index
    %32 = vector.load %arg7[%c0_19, %c0_20] : memref<32x32xf32, #tpu.memory_space<vmem>>, vector<32x32xf32>
    %cst_21 = arith.constant dense<0.000000e+00> : vector<8x32xf32>
    %33 = tpu.matmul %1, %32, %cst_21 {dimension_numbers = #tpu.dot_dimension_numbers<[1], [0], [0], [1], [0, 0, 1, 1], [], []>} : vector<8x32xf32>, vector<32x32xf32>, vector<8x32xf32> -> vector<8x32xf32>
    %c0_22 = arith.constant 0 : index
    %c0_23 = arith.constant 0 : index
    %34 = vector.load %arg8[%c0_22, %c0_23] : memref<1x32xf32, #tpu.memory_space<vmem>>, vector<1x32xf32>
    %35 = vector.broadcast %34 : vector<1x32xf32> to vector<8x32xf32>
    %36 = arith.addf %33, %35 : vector<8x32xf32>
    %c0_24 = arith.constant 0 : index
    %c0_25 = arith.constant 0 : index
    %37 = vector.load %arg9[%c0_24, %c0_25] : memref<32x32xf32, #tpu.memory_space<vmem>>, vector<32x32xf32>
    %cst_26 = arith.constant dense<0.000000e+00> : vector<8x32xf32>
    %38 = tpu.matmul %1, %37, %cst_26 {dimension_numbers = #tpu.dot_dimension_numbers<[1], [0], [0], [1], [0, 0, 1, 1], [], []>} : vector<8x32xf32>, vector<32x32xf32>, vector<8x32xf32> -> vector<8x32xf32>
    %c0_27 = arith.constant 0 : index
    %c0_28 = arith.constant 0 : index
    %39 = vector.load %arg10[%c0_27, %c0_28] : memref<1x32xf32, #tpu.memory_space<vmem>>, vector<1x32xf32>
    %40 = vector.broadcast %39 : vector<1x32xf32> to vector<8x32xf32>
    %41 = arith.addf %38, %40 : vector<8x32xf32>
    %42 = tpu.transpose %36, [1, 0] : vector<8x32xf32> -> vector<32x8xf32>
    %43 = vector.shape_cast %42 : vector<32x8xf32> to vector<4x8x8xf32>
    %44 = tpu.transpose %41, [1, 0] : vector<8x32xf32> -> vector<32x8xf32>
    %45 = vector.shape_cast %44 : vector<32x8xf32> to vector<4x8x8xf32>
    "tpu.trace_start"() <{level = 10 : i32, message = "hqd,hdk->hqk"}> : () -> ()
    %cst_29 = arith.constant dense<0.000000e+00> : vector<4x8x8xf32>
    %46 = tpu.matmul %31, %43, %cst_29 {dimension_numbers = #tpu.dot_dimension_numbers<[2], [1], [1], [2], [0, 0, 0, 1, 1, 2], [0], [0]>} : vector<4x8x8xf32>, vector<4x8x8xf32>, vector<4x8x8xf32> -> vector<4x8x8xf32>
    "tpu.trace_stop"() : () -> ()
    %cst_30 = arith.constant 0.353553385 : f32
    %47 = vector.broadcast %cst_30 : f32 to vector<4x8x8xf32>
    %48 = arith.mulf %46, %47 : vector<4x8x8xf32>
    %cst_31 = arith.constant dense<0xFF800000> : vector<4x8xf32>
    %49 = vector.multi_reduction <maximumf>, %48, %cst_31 [2] : vector<4x8x8xf32> to vector<4x8xf32>
    %50 = vector.shape_cast %49 : vector<4x8xf32> to vector<4x8x1xf32>
    %51 = vector.broadcast %50 : vector<4x8x1xf32> to vector<4x8x8xf32>
    %52 = arith.subf %48, %51 : vector<4x8x8xf32>
    %53 = math.exp %52 : vector<4x8x8xf32>
    %cst_32 = arith.constant dense<0.000000e+00> : vector<4x8xf32>
    %54 = vector.multi_reduction <add>, %53, %cst_32 [2] : vector<4x8x8xf32> to vector<4x8xf32>
    %55 = vector.shape_cast %54 : vector<4x8xf32> to vector<4x8x1xf32>
    %56 = tpu.reciprocal %55 {approx = true} : vector<4x8x1xf32> -> vector<4x8x1xf32>
    %57 = vector.broadcast %56 : vector<4x8x1xf32> to vector<4x8x8xf32>
    %58 = arith.mulf %53, %57 : vector<4x8x8xf32>
    "tpu.trace_start"() <{level = 10 : i32, message = "hdk,hqk->hdq"}> : () -> ()
    %cst_33 = arith.constant dense<0.000000e+00> : vector<4x8x8xf32>
    %59 = tpu.matmul %45, %58, %cst_33 {dimension_numbers = #tpu.dot_dimension_numbers<[2], [2], [1], [1], [0, 0, 0, 1, 1, 1], [0], [0]>} : vector<4x8x8xf32>, vector<4x8x8xf32>, vector<4x8x8xf32> -> vector<4x8x8xf32>
    "tpu.trace_stop"() : () -> ()
    %60 = vector.shape_cast %59 : vector<4x8x8xf32> to vector<32x8xf32>
    %c0_34 = arith.constant 0 : index
    %c0_35 = arith.constant 0 : index
    %61 = vector.load %arg11[%c0_34, %c0_35] : memref<32x32xf32, #tpu.memory_space<vmem>>, vector<32x32xf32>
    %cst_36 = arith.constant dense<0.000000e+00> : vector<32x8xf32>
    %62 = tpu.matmul %61, %60, %cst_36 {dimension_numbers = #tpu.dot_dimension_numbers<[1], [0], [0], [1], [0, 0, 1, 1], [], []>} : vector<32x32xf32>, vector<32x8xf32>, vector<32x8xf32> -> vector<32x8xf32>
    %63 = tpu.transpose %62, [1, 0] : vector<32x8xf32> -> vector<8x32xf32>
    %64 = arith.addf %3, %63 : vector<8x32xf32>
    %c0_37 = arith.constant 0 : index
    %c0_38 = arith.constant 0 : index
    %65 = vector.load %arg12[%c0_37, %c0_38] : memref<1x32xf32, #tpu.memory_space<vmem>>, vector<1x32xf32>
    %66 = vector.broadcast %65 : vector<1x32xf32> to vector<8x32xf32>
    %67 = arith.addf %64, %66 : vector<8x32xf32>
    %cst_39 = arith.constant dense<0.000000e+00> : vector<8xf32>
    %68 = vector.multi_reduction <add>, %67, %cst_39 [1] : vector<8x32xf32> to vector<8xf32>
    %69 = vector.shape_cast %68 : vector<8xf32> to vector<8x1xf32>
    %cst_40 = arith.constant 3.200000e+01 : f32
    %70 = vector.broadcast %cst_40 : f32 to vector<8x1xf32>
    %71 = arith.divf %69, %70 : vector<8x1xf32>
    %72 = vector.broadcast %71 : vector<8x1xf32> to vector<8x32xf32>
    %73 = arith.subf %67, %72 : vector<8x32xf32>
    %74 = arith.mulf %73, %73 : vector<8x32xf32>
    %cst_41 = arith.constant dense<0.000000e+00> : vector<8xf32>
    %75 = vector.multi_reduction <add>, %74, %cst_41 [1] : vector<8x32xf32> to vector<8xf32>
    %76 = vector.shape_cast %75 : vector<8xf32> to vector<8x1xf32>
    %cst_42 = arith.constant 3.200000e+01 : f32
    %77 = vector.broadcast %cst_42 : f32 to vector<8x1xf32>
    %78 = arith.divf %76, %77 : vector<8x1xf32>
    %cst_43 = arith.constant 9.99999997E-7 : f32
    %79 = vector.broadcast %cst_43 : f32 to vector<8x1xf32>
    %80 = arith.addf %78, %79 : vector<8x1xf32>
    %81 = math.rsqrt %80 : vector<8x1xf32>
    %82 = vector.broadcast %81 : vector<8x1xf32> to vector<8x32xf32>
    %83 = arith.mulf %73, %82 : vector<8x32xf32>
    %c0_44 = arith.constant 0 : index
    %c0_45 = arith.constant 0 : index
    %84 = vector.load %arg13[%c0_44, %c0_45] : memref<1x32xf32, #tpu.memory_space<vmem>>, vector<1x32xf32>
    %85 = vector.broadcast %84 : vector<1x32xf32> to vector<8x32xf32>
    %86 = arith.mulf %83, %85 : vector<8x32xf32>
    %c0_46 = arith.constant 0 : index
    %c0_47 = arith.constant 0 : index
    %87 = vector.load %arg14[%c0_46, %c0_47] : memref<1x32xf32, #tpu.memory_space<vmem>>, vector<1x32xf32>
    %88 = vector.broadcast %87 : vector<1x32xf32> to vector<8x32xf32>
    %89 = arith.addf %86, %88 : vector<8x32xf32>
    %c0_48 = arith.constant 0 : index
    %c0_49 = arith.constant 0 : index
    %90 = vector.load %arg15[%c0_48, %c0_49] : memref<32x128xf32, #tpu.memory_space<vmem>>, vector<32x128xf32>
    %cst_50 = arith.constant dense<0.000000e+00> : vector<8x128xf32>
    %91 = tpu.matmul %89, %90, %cst_50 {dimension_numbers = #tpu.dot_dimension_numbers<[1], [0], [0], [1], [0, 0, 1, 1], [], []>} : vector<8x32xf32>, vector<32x128xf32>, vector<8x128xf32> -> vector<8x128xf32>
    %c0_51 = arith.constant 0 : index
    %c0_52 = arith.constant 0 : index
    %92 = vector.load %arg16[%c0_51, %c0_52] : memref<1x128xf32, #tpu.memory_space<vmem>>, vector<1x128xf32>
    %93 = vector.broadcast %92 : vector<1x128xf32> to vector<8x128xf32>
    %94 = arith.addf %91, %93 : vector<8x128xf32>
    %cst_53 = arith.constant 5.000000e-01 : f32
    %95 = vector.broadcast %cst_53 : f32 to vector<8x128xf32>
    %96 = arith.mulf %94, %95 : vector<8x128xf32>
    %cst_54 = arith.constant 0.707106769 : f32
    %97 = vector.broadcast %cst_54 : f32 to vector<8x128xf32>
    %98 = arith.mulf %94, %97 : vector<8x128xf32>
    %99 = math.erf %98 : vector<8x128xf32>
    %cst_55 = arith.constant 1.000000e+00 : f32
    %100 = vector.broadcast %cst_55 : f32 to vector<8x128xf32>
    %101 = arith.addf %100, %99 : vector<8x128xf32>
    %102 = arith.mulf %96, %101 : vector<8x128xf32>
    %c0_56 = arith.constant 0 : index
    %c0_57 = arith.constant 0 : index
    %103 = vector.load %arg17[%c0_56, %c0_57] : memref<128x32xf32, #tpu.memory_space<vmem>>, vector<128x32xf32>
    %cst_58 = arith.constant dense<0.000000e+00> : vector<8x32xf32>
    %104 = tpu.matmul %102, %103, %cst_58 {dimension_numbers = #tpu.dot_dimension_numbers<[1], [0], [0], [1], [0, 0, 1, 1], [], []>} : vector<8x128xf32>, vector<128x32xf32>, vector<8x32xf32> -> vector<8x32xf32>
    %c0_59 = arith.constant 0 : index
    %c0_60 = arith.constant 0 : index
    %105 = vector.load %arg18[%c0_59, %c0_60] : memref<1x32xf32, #tpu.memory_space<vmem>>, vector<1x32xf32>
    %106 = vector.broadcast %105 : vector<1x32xf32> to vector<8x32xf32>
    %107 = arith.addf %104, %106 : vector<8x32xf32>
    %108 = arith.addf %67, %107 : vector<8x32xf32>
    %c0_61 = arith.constant 0 : index
    %c0_62 = arith.constant 0 : index
    %c0_63 = arith.constant 0 : index
    %109 = vector.load %arg19[%c0_61, %c0_62, %c0_63] : memref<1x8x32xf32, #tpu.memory_space<vmem>>, vector<1x8x32xf32>
    %110 = vector.shape_cast %109 : vector<1x8x32xf32> to vector<8x32xf32>
    %111 = vector.shape_cast %108 : vector<8x32xf32> to vector<1x8x32xf32>
    tpu.vector_store %arg19[%c0_61, %c0_62, %c0_63], %111 {strides = array<i32>} : memref<1x8x32xf32, #tpu.memory_space<vmem>>, vector<1x8x32xf32>,
    return
  }
  func.func @transform_0(%arg0: i32, %arg1: i32) -> (i32, i32, i32) {
    %c0_i32 = arith.constant 0 : i32
    %c0_i32_0 = arith.constant 0 : i32
    %c0_i32_1 = arith.constant 0 : i32
    return %arg0, %c0_i32, %c0_i32_0 : i32, i32, i32
  }
  func.func @transform_1(%arg0: i32, %arg1: i32) -> (i32, i32, i32) {
    %c0_i32 = arith.constant 0 : i32
    %c0_i32_0 = arith.constant 0 : i32
    return %arg0, %arg1, %c0_i32 : i32, i32, i32
  }
  func.func @transform_2(%arg0: i32, %arg1: i32) -> (i32, i32, i32, i32) {
    %c0_i32 = arith.constant 0 : i32
    %c0_i32_0 = arith.constant 0 : i32
    %c0_i32_1 = arith.constant 0 : i32
    return %arg0, %c0_i32, %arg1, %c0_i32_0 : i32, i32, i32, i32
  }
  func.func @transform_3(%arg0: i32, %arg1: i32) -> (i32, i32, i32) {
    %c0_i32 = arith.constant 0 : i32
    %c0_i32_0 = arith.constant 0 : i32
    %c0_i32_1 = arith.constant 0 : i32
    %c0_i32_2 = arith.constant 0 : i32
    return %c0_i32, %c0_i32_0, %c0_i32_1 : i32, i32, i32
  }
  func.func @transform_4(%arg0: i32, %arg1: i32) -> (i32, i32, i32) {
    %c0_i32 = arith.constant 0 : i32
    %c0_i32_0 = arith.constant 0 : i32
    %c0_i32_1 = arith.constant 0 : i32
    %c0_i32_2 = arith.constant 0 : i32
    return %c0_i32, %c0_i32_0, %c0_i32_1 : i32, i32, i32
  }
  func.func @transform_5(%arg0: i32, %arg1: i32) -> (i32, i32) {
    %c0_i32 = arith.constant 0 : i32
    %c0_i32_0 = arith.constant 0 : i32
    %c0_i32_1 = arith.constant 0 : i32
    return %c0_i32, %c0_i32_0 : i32, i32
  }
  func.func @transform_6(%arg0: i32, %arg1: i32) -> (i32, i32) {
    %c0_i32 = arith.constant 0 : i32
    %c0_i32_0 = arith.constant 0 : i32
    %c0_i32_1 = arith.constant 0 : i32
    return %c0_i32, %c0_i32_0 : i32, i32
  }
  func.func @transform_7(%arg0: i32, %arg1: i32) -> (i32, i32) {
    %c0_i32 = arith.constant 0 : i32
    %c0_i32_0 = arith.constant 0 : i32
    %c0_i32_1 = arith.constant 0 : i32
    return %c0_i32, %c0_i32_0 : i32, i32
  }
  func.func @transform_8(%arg0: i32, %arg1: i32) -> (i32, i32) {
    %c0_i32 = arith.constant 0 : i32
    %c0_i32_0 = arith.constant 0 : i32
    %c0_i32_1 = arith.constant 0 : i32
    return %c0_i32, %c0_i32_0 : i32, i32
  }
  func.func @transform_9(%arg0: i32, %arg1: i32) -> (i32, i32) {
    %c0_i32 = arith.constant 0 : i32
    %c0_i32_0 = arith.constant 0 : i32
    %c0_i32_1 = arith.constant 0 : i32
    return %c0_i32, %c0_i32_0 : i32, i32
  }
  func.func @transform_10(%arg0: i32, %arg1: i32) -> (i32, i32) {
    %c0_i32 = arith.constant 0 : i32
    %c0_i32_0 = arith.constant 0 : i32
    %c0_i32_1 = arith.constant 0 : i32
    return %c0_i32, %c0_i32_0 : i32, i32
  }
  func.func @transform_11(%arg0: i32, %arg1: i32) -> (i32, i32) {
    %c0_i32 = arith.constant 0 : i32
    %c0_i32_0 = arith.constant 0 : i32
    %c0_i32_1 = arith.constant 0 : i32
    return %c0_i32, %c0_i32_0 : i32, i32
  }
  func.func @transform_12(%arg0: i32, %arg1: i32) -> (i32, i32) {
    %c0_i32 = arith.constant 0 : i32
    %c0_i32_0 = arith.constant 0 : i32
    %c0_i32_1 = arith.constant 0 : i32
    return %c0_i32, %c0_i32_0 : i32, i32
  }
  func.func @transform_13(%arg0: i32, %arg1: i32) -> (i32, i32) {
    %c0_i32 = arith.constant 0 : i32
    %c0_i32_0 = arith.constant 0 : i32
    %c0_i32_1 = arith.constant 0 : i32
    return %c0_i32, %c0_i32_0 : i32, i32
  }
  func.func @transform_14(%arg0: i32, %arg1: i32) -> (i32, i32) {
    %c0_i32 = arith.constant 0 : i32
    %c0_i32_0 = arith.constant 0 : i32
    %c0_i32_1 = arith.constant 0 : i32
    return %c0_i32, %c0_i32_0 : i32, i32
  }
  func.func @transform_15(%arg0: i32, %arg1: i32) -> (i32, i32) {
    %c0_i32 = arith.constant 0 : i32
    %c0_i32_0 = arith.constant 0 : i32
    %c0_i32_1 = arith.constant 0 : i32
    return %c0_i32, %c0_i32_0 : i32, i32
  }
  func.func @transform_16(%arg0: i32, %arg1: i32) -> (i32, i32) {
    %c0_i32 = arith.constant 0 : i32
    %c0_i32_0 = arith.constant 0 : i32
    %c0_i32_1 = arith.constant 0 : i32
    return %c0_i32, %c0_i32_0 : i32, i32
  }
  func.func @transform_17(%arg0: i32, %arg1: i32) -> (i32, i32, i32) {
    %c0_i32 = arith.constant 0 : i32
    %c0_i32_0 = arith.constant 0 : i32
    return %arg0, %arg1, %c0_i32 : i32, i32, i32
  }
}

</mosaic_0001>

<bundles_post_ra>
// kernel: tpu_custom_call.1
= control target key start
LH: loop header
LB: loop body
LE: loop exit
PB: predicated region body
PF: predicated region fallthrough
CT: control target
= control target key end

     0   :  { %s3233_s0 = inlined_call_operand.hbm [shape: f32[2,8,32], index: 0, kind: input, shape index: {}]   ;;  %s3234_s1 = inlined_call_operand.hbm [shape: f32[2,8,32], index: 1, kind: input, shape index: {}]   ;;  %s3235_s2 = inlined_call_operand.vmem [shape: f32[2,4,8,8], index: 2, kind: input, shape index: {}]   ;;  %s3236_s3 = inlined_call_operand.vmem [shape: f32[4,1,8], index: 3, kind: input, shape index: {}]   ;;  %s3237_s4 = inlined_call_operand.hbm [shape: f32[4,1,8], index: 4, kind: input, shape index: {}]   ;;  %s3238_s5 = inlined_call_operand.vmem [shape: f32[32,32], index: 5, kind: input, shape index: {}]   ;;  %s3239_s6 = inlined_call_operand.vmem [shape: f32[1,32], index: 6, kind: input, shape index: {}]   ;;  %s3240_s7 = inlined_call_operand.vmem [shape: f32[32,32], index: 7, kind: input, shape index: {}]   ;;  %s3241_s8 = inlined_call_operand.vmem [shape: f32[1,32], index: 8, kind: input, shape index: {}]   ;;  %s3242_s9 = inlined_call_operand.vmem [shape: f32[32,32], index: 9, kind: input, shape index: {}]   ;;  %s3243_s10 = inlined_call_operand.vmem [shape: f32[1,32], index: 10, kind: input, shape index: {}]   ;;  %s3244_s11 = inlined_call_operand.vmem [shape: f32[1,32], index: 11, kind: input, shape index: {}]   ;;  %s3245_s12 = inlined_call_operand.vmem [shape: f32[1,32], index: 12, kind: input, shape index: {}]   ;;  %s3246_s13 = inlined_call_operand.hbm [shape: f32[32,128], index: 13, kind: input, shape index: {}]   ;;  %s3247_s14 = inlined_call_operand.vmem [shape: f32[1,128], index: 14, kind: input, shape index: {}]   ;;  %s3248_s15 = inlined_call_operand.vmem [shape: f32[128,32], index: 15, kind: input, shape index: {}]   ;;  %s3249_s16 = inlined_call_operand.vmem [shape: f32[1,32], index: 16, kind: input, shape index: {}]   ;;  %s3250_s17 = inlined_call_operand.hbm [shape: f32[2,8,32], index: 17, kind: output, shape index: {}]  }
   0x1   :  { %3260 = sst [smem:[#allocation21_spill]] %s3233_s0 }
   0x2   :  { %3261 = sst [smem:[#allocation22_spill]] %s3234_s1 }
   0x3   :  { %3262 = sst [smem:[#allocation23_spill]] %s3237_s4 }
   0x4   :  { %3263 = sst [smem:[#allocation24_spill]] %s3244_s11 }
   0x5   :  { %3264 = sst [smem:[#allocation25_spill]] %s3245_s12 }
   0x6   :  { %3265 = sst [smem:[#allocation26_spill]] %s3246_s13 }
   0x7   :  { %3266 = sst [smem:[#allocation27_spill]] %s3247_s14 }
   0x8   :  { %3267 = sst [smem:[#allocation28_spill]] %s3248_s15 }
   0x9   :  { %3268 = sst [smem:[#allocation29_spill]] %s3249_s16 }
   0xa   :  { %3269 = sst [smem:[#allocation30_spill]] %s3250_s17 }
   0xb   :  { %22 = vsyncpa [#allocation3], 0 }
   0xc   :  { %24 = vsyncpa [#allocation3 + $0x1], 0 }
   0xd   :  { %25 = vsyncpa [#allocation6], 0 }
   0xe   :  { %27 = vsyncpa [#allocation6 + $0x1], 0 }
   0xf   :  { %28 = vsyncpa [#allocation9], 0 }
  0x10   :  { %29 = vsyncpa [#allocation4], 0 }
  0x11   :  { %31 = vsyncpa [#allocation4 + $0x1], 0  ;;  %s2808_s24 = smov 0   ;;  %s2810_s25 = smov 0  }
  0x12   :  { %s2812_s26 = smov 0   ;;  %s2814_s27 = smov 0  }
  0x13   :  { %s2816_s28 = smov 0   ;;  %s2818_s29 = smov 0  }
  0x14 LB: > { %3270 = sst [smem:[#allocation16_spill]] %s2685_s24  ;;  %s2839_s0 = sadd.s32 4294967295, %s2705_s29   ;;  %s2705_s29 = sphi %s2818_s29, %s37_s29   ;;  %s2701_s28 = sphi %s2816_s28, %s3302_s28   ;;  %s2697_s27 = sphi %s2814_s27, %s3301_s27   ;;  %s2693_s26 = sphi %s2812_s26, %s3305_s26   ;;  %s2689_s25 = sphi %s2810_s25, %s3304_s25   ;;  %s2685_s24 = sphi %s2808_s24, %s3303_s24  }
  0x15   : > { %3271 = sst [smem:[#allocation17_spill]] %s2701_s28  ;;  %s2155_s30 = sadd.s32 4294967294, %s2705_s29  }
  0x16   : > { %p69_p0 = scmp.ne.s32.totalorder %s2689_s25, %s2685_s24  ;;  %p3254_p1 = scmp.eq.s32.totalorder %s2839_s0, 0 }
  0x17   : > { %p451_p3 = scmp.eq.s32.totalorder %s2155_s30, 1  ;;  %p2156_p5 = scmp.ge.s32.totalorder %s2705_s29, 1 }
  0x18   : > { %p2848_p4 = por %p3254_p1, %p69_p0  ;;  %p458_p7 = scmp.lt.s32.totalorder %s2705_s29, 3 }
  0x19   : > { %p2853_p6 = por %p451_p3, %p69_p0  ;;  %s2707_s20 = smov [#allocation7]  }
  0x1a   : > { %p2858_p8 = pnand %p2156_p5, %p458_p7  ;;  %s473_s21 = sshll.u32 %s2707_s20, 4  ;;  %s474_s21 = int_to_ptr.vmem [resolvable:$true] %s473_s21 }
  0x1b   : > { %s3273_s19 = scalar_select %p2853_p6, 1, 0 }
  0x1c   : > { %p2403_p9 = pneg %p2858_p8  ;;  %s2708_s23 = smov [#allocation8]  }
  0x1d   : > { %3274 = sst [smem:[#allocation18_spill]] %s3273_s19  ;;  %s510_s30 = sshll.u32 %s2708_s23, 4  ;;  %s511_s30 = int_to_ptr.vmem [resolvable:$true] %s510_s30 }
  0x1e   : > { %p2867_p11 = pnand %p2403_p9, %p3254_p1  ;;  %s2516_s19 = scalar_lea.vmem %s474_s21, 64 }
  0x1f   : > { %p2517_p13 = scmp.ne.s32.totalorder %s474_s21, %s2516_s19  ;;  %p2524_p5 = scmp.lt.s32.totalorder %s474_s21, %s474_s21 }
  0x20   : > { %p2507_p12 = pneg %p2867_p11  ;;  %p2525_p7 = scmp.lt.s32.totalorder %s2516_s19, %s2516_s19 }
  0x22   : > { %p2519_p0 = pnand %p2517_p13, %p2507_p12  ;;  %p2526_p10 = por %p2525_p7, %p2524_p5 }
  0x24   : > { %p2520_p3 = pneg %p2519_p0 }
  0x26   : > { %p2527_p9 = pnand %p2526_p10, %p2520_p3 }
  0x28   : > { %2530 = shalt.err (!%p2527_p9)
}
  0x29   : > { %s2709_s20 = smov 16   ;;  %s2710_s24 = smov 1  }
  0x2a   : > { %s3277_s4 = sld [smem:[#allocation23_spill]]  ;;  %s2542_s16 = scalar_lea.vmem %s511_s30, 512 }
  0x2b   : > { %p2543_p1 = scmp.ne.s32.totalorder %s511_s30, %s2542_s16  ;;  %p2550_p2 = scmp.lt.s32.totalorder %s511_s30, %s511_s30 }
  0x2c   : > { %p2551_p6 = scmp.lt.s32.totalorder %s2542_s16, %s2542_s16 }
  0x2d   : > { %p2545_p13 = pnand %p2543_p1, %p2507_p12 }
  0x2e   : > { %p2552_p5 = por %p2551_p6, %p2550_p2 }
  0x2f   : > { %p2546_p0 = pneg %p2545_p13 }
  0x30   : > { %2406 = dma.hbm_to_vmem [thread:$0]  (!%p2867_p11), %s3277_s4, 64, %s474_s21, [#allocation6], %s2709_s20, %s2709_s20, %s2710_s24  }
  0x31   : > { %p2553_p10 = pnand %p2552_p5, %p2546_p0 }
  0x33   : > { %2556 = shalt.err (!%p2553_p10)
}
  0x34   : > { %s2711_s19 = smov 128   ;;  %s2712_s17 = smov 8  }
  0x35   : > { %s3278_s13 = sld [smem:[#allocation26_spill]]  ;;  %s49_s16 = sadd.s32 1, %s2701_s28 }
  0x36   : > { %s56_s20 = sadd.s32 1, %s2693_s26  ;;  %p51_p1 = scmp.ge.s32.totalorder %s49_s16, 2 }
  0x37   : > { %p63_p2 = scmp.ne.s32.totalorder %s2693_s26, %s2689_s25  ;;  %p64_p6 = scmp.eq.s32.totalorder %s2705_s29, 0 }
  0x38   : > { %p2423_p12 = scmp.lt.s32.totalorder %s2705_s29, 2  ;;  %s3307_s16 = smov (%p51_p1, %s49_s16), 0 }
  0x39   : > { %3279 = sst [smem:[#allocation19_spill]] %s3307_s16  ;;  %p65_p3 = por %p64_p6, %p63_p2 }
  0x3a   : > { %p3280_p7 = scmp.eq.s32.totalorder %s2839_s0, 1  ;;  %s53_s22 = ssub.s32 %s2701_s28, %s3307_s16 }
  0x3b   : > { %2409 = dma.hbm_to_vmem [thread:$0]  (!%p2867_p11), %s3278_s13, 512, %s511_s30, [#allocation9], %s2711_s19, %s2711_s19, %s2712_s17  }
  0x3c   : > { %p2899_p9 = por %p3280_p7, %p63_p2  ;;  %s533_s24 = sand.u32 1, %s2693_s26  }
  0x3d   : > { %p54_p13 = scmp.eq.s32.totalorder %s53_s22, 0  ;;  %s2160_s30 = sshll.u32 %s533_s24, 3 }
  0x3e   : > { %s3281_s23 = scalar_select %p2899_p9, 1, 0 }
  0x3f   : > { %s2161_s19 = sshll.u32 %s2701_s28, 7  ;;  %s3283_s13 = sld [smem:[#allocation21_spill]] }
  0x40   : > { %3282 = sst [smem:[#allocation20_spill]] %s3281_s23  ;;  %s537_s12 = scalar_lea.vmem [#allocation2], %s2160_s30 }
  0x41   : > { %s2908_s17 = scalar_select %p54_p13, %s2693_s26, %s56_s20  }
  0x42   : > { %s544_s11 = sshll.u32 %s537_s12, 4  ;;  %p2915_p11 = pnand %p2423_p12, %p65_p3  ;;  %s545_s11 = int_to_ptr.vmem [resolvable:$true] %s544_s11 }
  0x43   : > { %s3285_s23 = sld [smem:[#allocation22_spill]]  ;;  %s534_s20 = scalar_lea.sflag [#allocation3], %s533_s24 }
  0x44   : > { %p2559_p0 = pneg %p2915_p11  ;;  %s2570_s4 = scalar_lea.vmem %s545_s11, 128 }
  0x45   : > { %s542_s14 = scalar_lea.hbm %s3283_s13, %s2161_s19  ;;  %p2571_p5 = scmp.ne.s32.totalorder %s545_s11, %s2570_s4 }
  0x46   : > { %s2713_s12 = smov [#allocation2]  }
  0x47   : > { %p2573_p10 = pnand %p2571_p5, %p2559_p0  ;;  %s2575_s13 = sshll.u32 %s2713_s12, 4  ;;  %s2576_s13 = int_to_ptr.vmem [resolvable:$false] %s2575_s13 }
  0x48   : > { %s2577_s21 = scalar_lea.vmem %s2576_s13, 256  ;;  %p2578_p2 = scmp.lt.s32.totalorder %s545_s11, %s2576_s13 }
  0x49   : > { %s2922_s28 = scalar_lea.hbm %s3285_s23, %s2161_s19  ;;  %p2574_p1 = pneg %p2573_p10 }
  0x4a   : > { %p2579_p6 = scmp.lt.s32.totalorder %s2577_s21, %s2570_s4 }
  0x4c   : > { %p2580_p12 = por %p2579_p6, %p2578_p2 }
  0x4e   : > { %p2581_p3 = pnand %p2580_p12, %p2574_p1 }
  0x50   : > { %2584 = shalt.err (!%p2581_p3)
}
  0x51   : > { %2413 = dma.hbm_to_vmem [thread:$0]  (!%p2915_p11), %s542_s14, 128, %s545_s11, %s534_s20  }
  0x52   : > { %s551_s16 = sand.u32 1, %s2705_s29   ;;  %s555_s23 = scalar_lea.vmem [#allocation5], %s2160_s30 }
  0x53   : > { %s563_s24 = sshll.u32 %s555_s23, 4  ;;  %s552_s19 = scalar_lea.sflag [#allocation6], %s551_s16  ;;  %s564_s24 = int_to_ptr.vmem [resolvable:$true] %s563_s24 }
  0x54   : > { %s2598_s22 = scalar_lea.vmem %s564_s24, 128  ;;  %s2714_s4 = smov [#allocation5]  }
  0x55   : > { %p2599_p7 = scmp.ne.s32.totalorder %s564_s24, %s2598_s22  ;;  %s2603_s12 = sshll.u32 %s2714_s4, 4  ;;  %s2604_s12 = int_to_ptr.vmem [resolvable:$false] %s2603_s12 }
  0x56   : > { %s2605_s13 = scalar_lea.vmem %s2604_s12, 256  ;;  %p2606_p10 = scmp.lt.s32.totalorder %s564_s24, %s2604_s12 }
  0x57   : > { %p2601_p13 = pnand %p2599_p7, %p2559_p0  ;;  %p2607_p1 = scmp.lt.s32.totalorder %s2605_s13, %s2598_s22 }
  0x59   : > { %p2602_p5 = pneg %p2601_p13  ;;  %p2608_p2 = por %p2607_p1, %p2606_p10 }
  0x5b   : > { %p2609_p6 = pnand %p2608_p2, %p2602_p5 }
  0x5d   : > { %2612 = shalt.err (!%p2609_p6)
}
  0x5e   : > { %2416 = dma.hbm_to_vmem [thread:$0]  (!%p2915_p11), %s2922_s28, 128, %s564_s24, %s552_s19  }
  0x5f   : > { %583 = sbr.rel (%p2858_p8) target bundleno = 2250 (0x8ca), region = 88  ;;  %s2941_s11 = sand.u32 (!%p2858_p8), 1, %s2689_s25  }
  0x60   : > { %s2944_s14 = sshll.u32 (!%p2858_p8), %s2941_s11, 3  ;;  %s586_s30 = scalar_lea.sflag (!%p2858_p8), [#allocation3], %s2941_s11 }
  0x61   : > { %s589_s20 = scalar_lea.vmem (!%p2858_p8), [#allocation2], %s2944_s14 }
  0x64   : > { %2664 = dma.done.wait (%p2848_p4), %s586_s30, 128  }
  0x65   : > { %2666 = vsyncadd (%p2848_p4), %s586_s30, 4294967168  ;;  %s594_s15 = sand.u32 1, %s2839_s0   ;;  %s598_s1 = scalar_lea.vmem [#allocation5], %s2944_s14 }
  0x66   : > { %s595_s28 = scalar_lea.sflag [#allocation6], %s594_s15 }
  0x67   : > { %2668 = dma.done.wait (%p2848_p4), %s595_s28, 128  }
  0x68   : > { %2670 = vsyncadd (%p2848_p4), %s595_s28, 4294967168  ;;  %p3286_p8 = scmp.eq.s32.totalorder %s2839_s0, 0 }
  0x6a   : > { %2672 = dma.done.wait (%p3286_p8), [#allocation6], 64   ;;  %p3287_p11 = pmov %p3286_p8 }
  0x6b   : > { %p3288_p0 = pmov %p3286_p8 }
  0x6c   : > { %2674 = vsyncadd (%p3287_p11), [#allocation6], 4294967232 }
  0x6d   : > { %2676 = dma.done.wait (%p3288_p0), [#allocation9], 512   ;;  %p3289_p12 = pmov %p3288_p0 }
  0x6e   : > { %v2715_v0 = vmov 0.0   ;;  %vm2716_vm0 = vmmov 0   ;;  %vm684_vm1 = vcmask 261120   ;;  %v773_v1 = vld [vmem:[%s3238_s5 + $0x18] sm:$0xff]  ;;  %v772_v3 = vld [vmem:[%s3238_s5 + $0x10] sm:$0xff]  ;;  %v771_v5 = vld [vmem:[%s3238_s5 + $0x8] sm:$0xff] }
  0x6f   : > { %2678 = vsyncadd (%p3289_p12), [#allocation9], 4294966784  ;;  %2267 = vmatprep.subr.mxu1 %v2715_v0  ;;  %2275 = vmatprep.mubr.msk.f32.mxu1 %vm2716_vm0, %v2715_v0  ;;  %v2975_v2 = vld [vmem:[%s598_s1] sm:$0xff]  ;;  %v770_v6 = vld [vmem:[%s3238_s5] sm:$0xff]  ;;  %p670_p4 = scmp.lt.s32.totalorder %s2697_s27, 1  ;;  %vm999_vm2 = vcmask 64512  }
  0x70   : > { %2289 = vmatprep.subr.mxu0 %v2715_v0  ;;  %2291 = vmatprep.mubr.msk.f32.mxu0 %vm2716_vm0, %v2715_v0  ;;  %v685_v4 = vsel %vm684_vm1, %v2975_v2, 0.0  ;;  %v678_v7 = vld [vmem:[%s589_s20] sm:$0xff]  ;;  %v857_v13 = vld [vmem:[%s3240_s7 + $0x18] sm:$0xff]  ;;  %v856_v14 = vld [vmem:[%s3240_s7 + $0x10] sm:$0xff]  ;;  %s3290_s15 = sld [smem:[#allocation28_spill]]  ;;  %s2207_s30 = sshll.u32 %s2697_s27, 7 }
  0x71   : > { %2268 = vmatpush3.msra.mxu1 %v773_v1  ;;  %686 = vadd.xlane.f32.xlu0 %v685_v4  ;;  %v855_v15 = vld [vmem:[%s3240_s7 + $0x8] sm:$0xff]  ;;  %v2180_v16 = vld [vmem:[%s3239_s6] ss:$0 sm:$0xff]  ;;  %s671_s0 = scalar_select %p670_p4, %s2697_s27, 1  ;;  %v2173_v35 = vld [vmem:[%s3236_s3 + $0x1] ss:$0 sm:$0xff] }
  0x72   : > { %2269 = vmatprep.subr.mxu1 %v2715_v0  ;;  %v854_v17 = vld [vmem:[%s3240_s7] sm:$0xff]  ;;  %s3292_s12 = sld [smem:[#allocation25_spill]]  ;;  %s669_s20 = scalar_lea.vmem [#allocation10], %s2944_s14 }
  0x73   : > { %2270 = vmatpush3.msra.mxu1 %v772_v3  ;;  %s2210_s16 = sshll.u32 %s671_s0, 5  ;;  %v2172_v29 = vld [vmem:[%s3236_s3] ss:$0 sm:$0xff]  ;;  %v2177_v42 = vld [vmem:[#allocation7 + $0x1] ss:$0 sm:$0xff]  ;;  %s3295_s13 = sld [smem:[#allocation29_spill]] }
  0x74   : > { %2271 = vmatprep.subr.mxu1 %v2715_v0  ;;  %s677_s19 = scalar_lea.vmem %s3235_s2, %s2210_s16  ;;  %v2176_v34 = vld [vmem:[#allocation7] ss:$0 sm:$0xff]  ;;  %v2174_v43 = vld [vmem:[%s3236_s3 + $0x2] ss:$0 sm:$0xff]  ;;  %v2175_v50 = vld [vmem:[%s3236_s3 + $0x3] ss:$0 sm:$0xff] }
  0x75   : > { %2272 = vmatpush3.msra.mxu1 %v771_v5  ;;  %v680_v24 = vld [vmem:[%s677_s19] sm:$0xff]  ;;  %v681_v27 = vld [vmem:[%s677_s19 + $0x8] sm:$0xff]  ;;  %v682_v31 = vld [vmem:[%s677_s19 + $0x10] sm:$0xff]  ;;  %s2014_s28 = sshll.u32 %s669_s20, 4  ;;  %s3296_s21 = sld [smem:[#allocation30_spill]]  ;;  %s2015_s28 = int_to_ptr.vmem [resolvable:$true] %s2014_s28 }
  0x76   : > { %2273 = vmatprep.subr.mxu1 %v2715_v0  ;;  %v683_v37 = vld [vmem:[%s677_s19 + $0x18] sm:$0xff]  ;;  %v2178_v49 = vld [vmem:[#allocation7 + $0x2] ss:$0 sm:$0xff]  ;;  %v2179_v54 = vld [vmem:[#allocation7 + $0x3] ss:$0 sm:$0xff]  ;;  %s3291_s19 = sld [smem:[#allocation24_spill]] }
  0x77   : > { %2274 = vmatpush3.msra.mxu1 %v770_v6  ;;  %s2000_s16 = scalar_lea.sflag [#allocation4], %s2941_s11  ;;  %s2613_s23 = scalar_lea.vmem %s2015_s28, 128 }
  0x78   : > { %2276 = vmatmul.mubr.msk.f32.vlgmr.msra.gmra.mxu1 %vm684_vm1, %v678_v7  ;;  %2278 = vmatprep.subr.mxu1 %v2715_v0  ;;  %p2614_p3 = scmp.ne.s32.totalorder %s2015_s28, %s2613_s23  ;;  %s2717_s27 = smov [#allocation10]  }
  0x79   : > { %2286 = vmatprep.mubr.msk.f32.mxu1 %vm2716_vm0, %v2715_v0  ;;  %2279 = vmatpush3.msra.mxu1 %v857_v13  ;;  %s2617_s14 = sshll.u32 %s2717_s27, 4  ;;  %s2618_s14 = int_to_ptr.vmem [resolvable:$false] %s2617_s14 }
  0x7a   : > { %2280 = vmatprep.subr.mxu1 %v2715_v0  ;;  %p2615_p7 = pnand %p2614_p3, %p2899_p9  ;;  %s2619_s24 = scalar_lea.vmem %s2618_s14, 256 }
  0x7b   : > { %2281 = vmatpush3.msra.mxu1 %v856_v14  ;;  %s2012_s0 = scalar_lea.hbm %s3296_s21, %s2207_s30  ;;  %p2620_p5 = scmp.lt.s32.totalorder %s2015_s28, %s2618_s14 }
  0x7c   : > { %2282 = vmatprep.subr.mxu1 %v2715_v0  ;;  %p2616_p13 = pneg %p2615_p7  ;;  %p2621_p10 = scmp.lt.s32.totalorder %s2619_s24, %s2613_s23 }
  0x7d   : > { %2283 = vmatpush3.msra.mxu1 %v855_v15 }
  0x7e   : > { %2284 = vmatprep.subr.mxu1 %v2715_v0  ;;  %p2622_p1 = por %p2621_p10, %p2620_p5 }
  0x7f   : > { %2285 = vmatpush3.msra.mxu1 %v854_v17 }
  0x80   : > { %2287 = vmatmul.mubr.msk.f32.vlgmr.msra.gmra.mxu1 %vm684_vm1, %v678_v7  ;;  %2294 = vmatprep.subr.mxu1 %v2715_v0  ;;  %p2623_p2 = pnand %p2622_p1, %p2616_p13 }
  0x81   : > { %2296 = vmatprep.mubr.msk.f32.mxu1 %vm2716_vm0, %v2715_v0 }
  0xfa   : > { %v687_v8 = vpop.xlane.xlu0 %686 }
  0xfb   : > { %v689_v9 = vmul.f32 0.03125, %v687_v8 }
  0xfd   : > { %v690_v10 = vsub.f32 %v2975_v2, %v689_v9  ;;  %v698_v26 = vsub.f32 %v680_v24, %v689_v9  ;;  %v699_v30 = vsub.f32 %v681_v27, %v689_v9  ;;  %v700_v36 = vsub.f32 %v682_v31, %v689_v9 }
  0xfe   : > { %v701_v44 = vsub.f32 %v683_v37, %v689_v9 }
  0xff   : > { %v691_v11 = vmul.f32 %v690_v10, %v690_v10 }
 0x101   : > { %v692_v12 = vsel %vm684_vm1, %v691_v11, 0.0 }
 0x102   : > { %693 = vadd.xlane.f32.xlu0 %v692_v12 }
 0x138   : > { %v850_v18 = vpop.f32.mrf.mxu1 }
 0x139   : > { %v851_v19 = vadd.f32 %v2180_v16, %v850_v18 }
 0x13a   : > { %v2277_v20 = vpop.f32.mrf.mxu1 }
 0x13b   : > { %935 = vxpose.xlu1.b32.start.end [1/1] (short) (narrow) %v851_v19, 32 }
 0x140   : > { %v931_v57 = vpop.f32.mrf.mxu1 }
 0x142   : > { %v2288_v58 = vpop.f32.mrf.mxu1 }
 0x18b   : > { %v694_v21 = vpop.xlane.xlu0 %693 }
 0x18c   : > { %v695_v22 = vmul.f32 0.03125, %v694_v21 }
 0x18e   : > { %v696_v23 = vadd.f32 1e-06, %v695_v22 }
 0x190   : > { %2483 = vrsqrt.f32 %v696_v23 }
 0x19d   : > { %v2484_v25 = vpop.eup %2483 }
 0x19e   : > { %v702_v28 = vmul.f32 %v2484_v25, %v698_v26  ;;  %v703_v33 = vmul.f32 %v2484_v25, %v699_v30  ;;  %v704_v41 = vmul.f32 %v2484_v25, %v700_v36  ;;  %v705_v48 = vmul.f32 %v2484_v25, %v701_v44 }
 0x1a0   : > { %v734_v32 = vmul.f32 %v2172_v29, %v702_v28  ;;  %v735_v40 = vmul.f32 %v2173_v35, %v703_v33  ;;  %v736_v47 = vmul.f32 %v2174_v43, %v704_v41  ;;  %v737_v53 = vmul.f32 %v2175_v50, %v705_v48  ;;  %v2182_v33 = vld [vmem:[%s3241_s8] ss:$0 sm:$0xff] }
 0x1a2   : > { %v766_v39 = vadd.f32 %v2176_v34, %v734_v32  ;;  %v767_v46 = vadd.f32 %v2177_v42, %v735_v40  ;;  %v768_v52 = vadd.f32 %v2178_v49, %v736_v47  ;;  %v769_v56 = vadd.f32 %v2179_v54, %v737_v53 }
 0x1a3   : > { %v932_v34 = vadd.f32 %v2182_v33, %v931_v57  ;;  %v1913_v33 = vld [vmem:[%s3290_s15 + $0x48] sm:$0xff] }
 0x1b7   : > { %v951_v38 = vpop.trf.xlu1 }
 0x1b8   : > { %2290 = vmatpush3.msra.mxu0 %v951_v38 }
 0x1b9   : > { %2292 = vmatmul.mubr.msk.f32.vlgmr.msra.gmra.mxu0 %vm999_vm2, %v766_v39  ;;  %2299 = vmatprep.subr.mxu0 %v2715_v0 }
 0x1ba   : > { %2301 = vmatprep.mubr.msk.f32.mxu0 %vm2716_vm0, %v2715_v0 }
 0x1bb   : > { %v952_v45 = vpop.trf.xlu1 }
 0x1bc   : > { %2295 = vmatpush3.msra.mxu1 %v952_v45 }
 0x1bd   : > { %2297 = vmatmul.mubr.msk.f32.vlgmr.msra.gmra.mxu1 %vm999_vm2, %v767_v46  ;;  %2304 = vmatprep.subr.mxu1 %v2715_v0 }
 0x1be   : > { %2306 = vmatprep.mubr.msk.f32.mxu1 %vm2716_vm0, %v2715_v0 }
 0x1bf   : > { %v953_v51 = vpop.trf.xlu1 }
 0x1c0   : > { %2300 = vmatpush3.msra.mxu0 %v953_v51  ;;  %v1644_v51 = vld [vmem:[%s3242_s9] sm:$0xff] }
 0x1c1   : > { %2302 = vmatmul.mubr.msk.f32.vlgmr.msra.gmra.mxu0 %vm999_vm2, %v768_v52  ;;  %2309 = vmatprep.subr.mxu0 %v2715_v0 }
 0x1c2   : > { %2311 = vmatprep.mubr.msk.f32.mxu0 %vm2716_vm0, %v2715_v0 }
 0x1c3   : > { %v954_v55 = vpop.trf.xlu1 }
 0x1c4   : > { %2305 = vmatpush3.msra.mxu1 %v954_v55 }
 0x1c5   : > { %2307 = vmatmul.mubr.msk.f32.vlgmr.msra.gmra.mxu1 %vm999_vm2, %v769_v56  ;;  %2314 = vmatprep.subr.mxu1 %v2715_v0 }
 0x1c6   : > { %2316 = vmatprep.mubr.msk.f32.mxu1 %vm2716_vm0, %v2715_v0 }
 0x279   : > { %v1069_v59 = vpop.f32.mrf.mxu0 }
 0x27a   : > { %v1292_v60 = vmul.f32 0.35355338, %v1069_v59 }
 0x27b   : > { %v2293_v61 = vpop.f32.mrf.mxu0 }
 0x27c   : > { %v1296_v62 = vsel %vm999_vm2, %v1292_v60, -inf  ;;  %v1646_v61 = vld [vmem:[%s3242_s9 + $0x10] sm:$0xff] }
 0x27d   : > { %1297 = vmax.xlane.f32.xlu0 %v1296_v62  ;;  %v1142_v63 = vpop.f32.mrf.mxu1  ;;  %v1647_v62 = vld [vmem:[%s3242_s9 + $0x18] sm:$0xff] }
 0x27e   : > { %v1293_v1 = vmul.f32 0.35355338, %v1142_v63 }
 0x27f   : > { %v2298_v3 = vpop.f32.mrf.mxu1 }
 0x280   : > { %v1299_v4 = vsel %vm999_vm2, %v1293_v1, -inf }
 0x281   : > { %v1215_v5 = vpop.f32.mrf.mxu0  ;;  %1300 = vmax.xlane.f32.xlu1 %v1299_v4 }
 0x282   : > { %v1294_v10 = vmul.f32 0.35355338, %v1215_v5  ;;  %v2200_v5 = vld [vmem:[%s3243_s10] ss:$0 sm:$0xff] }
 0x283   : > { %v2303_v6 = vpop.f32.mrf.mxu0 }
 0x284   : > { %v1302_v12 = vsel %vm999_vm2, %v1294_v10, -inf }
 0x285   : > { %v1288_v7 = vpop.f32.mrf.mxu1 }
 0x286   : > { %v1295_v8 = vmul.f32 0.35355338, %v1288_v7 }
 0x287   : > { %v2308_v9 = vpop.f32.mrf.mxu1 }
 0x288   : > { %v1305_v11 = vsel %vm999_vm2, %v1295_v8, -inf }
 0x289   : > { %1306 = vmax.xlane.f32.xlu0 %v1305_v11 }
 0x28d   : > { %1303 = vmax.xlane.f32.xlu0 %v1302_v12 }
 0x306   : > { %v1298_v13 = vpop.xlane.xlu0 %1297 }
 0x307   : > { %v1308_v14 = vsub.f32 %v1292_v60, %v1298_v13  ;;  %v1645_v60 = vld [vmem:[%s3242_s9 + $0x8] sm:$0xff] }
 0x309   : > { %v1312_v17 = vmul.f32 1.442695, %v1308_v14 }
 0x30a   : > { %v1301_v15 = vpop.xlane.xlu1 %1300 }
 0x30b   : > { %v1309_v16 = vsub.f32 %v1293_v1, %v1301_v15  ;;  %v1818_v15 = vld [vmem:[#allocation8 + $0x18] sm:$0xff] }
 0x30d   : > { %v1314_v18 = vmul.f32 1.442695, %v1309_v16  ;;  %v1817_v16 = vld [vmem:[#allocation8 + $0x10] sm:$0xff] }
 0x30f   : > { %2485 = vpow2.f32 %v1314_v18  ;;  %v1919_v18 = vld [vmem:[%s3290_s15 + $0x78] sm:$0xff] }
 0x310   : > { %2487 = vpow2.f32 %v1312_v17  ;;  %v1815_v17 = vld [vmem:[#allocation8] sm:$0xff] }
 0x312   : > { %v1307_v19 = vpop.xlane.xlu0 %1306 }
 0x313   : > { %v1311_v20 = vsub.f32 %v1295_v8, %v1307_v19  ;;  %v1918_v19 = vld [vmem:[%s3290_s15 + $0x70] sm:$0xff] }
 0x315   : > { %v1318_v21 = vmul.f32 1.442695, %v1311_v20  ;;  %v1917_v20 = vld [vmem:[%s3290_s15 + $0x68] sm:$0xff] }
 0x316   : > { %v1304_v22 = vpop.xlane.xlu0 %1303 }
 0x317   : > { %2489 = vpow2.f32 %v1318_v21  ;;  %v1310_v23 = vsub.f32 %v1294_v10, %v1304_v22  ;;  %v1916_v21 = vld [vmem:[%s3290_s15 + $0x60] sm:$0xff] }
 0x319   : > { %v1316_v24 = vmul.f32 1.442695, %v1310_v23 }
 0x31b   : > { %2491 = vpow2.f32 %v1316_v24 }
 0x31c   : > { %v2486_v25 = vpop.eup %2485 }
 0x31d   : > { %v1323_v26 = vsel %vm999_vm2, %v2486_v25, 0.0  ;;  %v2488_v27 = vpop.eup %2487 }
 0x31e   : > { %1324 = vadd.xlane.f32.xlu0 %v1323_v26  ;;  %v1320_v28 = vsel %vm999_vm2, %v2488_v27, 0.0  ;;  %v2201_v26 = vld [vmem:[%s3291_s19] ss:$0 sm:$0xff]  ;;  %s3293_s19 = sld [smem:[#allocation27_spill]] }
 0x322   : > { %1321 = vadd.xlane.f32.xlu0 %v1320_v28  ;;  %v2202_v28 = vld [vmem:[%s3292_s12] ss:$0 sm:$0xff] }
 0x324   : > { %v2490_v29 = vpop.eup %2489 }
 0x325   : > { %v1329_v30 = vsel %vm999_vm2, %v2490_v29, 0.0 }
 0x326   : > { %1330 = vadd.xlane.f32.xlu0 %v1329_v30 }
 0x328   : > { %v2492_v31 = vpop.eup %2491 }
 0x329   : > { %v1326_v32 = vsel %vm999_vm2, %v2492_v31, 0.0 }
 0x32a   : > { %1327 = vadd.xlane.f32.xlu0 %v1326_v32  ;;  %v1914_v32 = vld [vmem:[%s3290_s15 + $0x50] sm:$0xff] }
 0x357   : > { %967 = vxpose.xlu0.b32.start.end [1/1] (short) (narrow) %v932_v34, 32  ;;  %v1912_v34 = vld [vmem:[%s3290_s15 + $0x40] sm:$0xff] }
 0x3a7   : > { %v1325_v35 = vpop.xlane.xlu0 %1324 }
 0x3a8   : > { %2493 = vrcp.f32 %v1325_v35  ;;  %v1911_v35 = vld [vmem:[%s3290_s15 + $0x38] sm:$0xff] }
 0x3ab   : > { %v1322_v36 = vpop.xlane.xlu0 %1321 }
 0x3ac   : > { %2495 = vrcp.f32 %v1322_v36  ;;  %v1910_v36 = vld [vmem:[%s3290_s15 + $0x30] sm:$0xff] }
 0x3af   : > { %v1331_v40 = vpop.xlane.xlu0 %1330 }
 0x3b3   : > { %v1328_v42 = vpop.xlane.xlu0 %1327 }
 0x3b4   : > { %2497 = vrcp.f32 %v1328_v42  ;;  %v1904_v42 = vld [vmem:[%s3290_s15] sm:$0xff] }
 0x3b5   : > { %v2494_v37 = vpop.eup %2493  ;;  %2499 = vrcp.f32 %v1331_v40  ;;  %v1906_v40 = vld [vmem:[%s3290_s15 + $0x10] sm:$0xff] }
 0x3b6   : > { %v1337_v38 = vmul.f32 %v2494_v37, %v2486_v25  ;;  %v1909_v37 = vld [vmem:[%s3290_s15 + $0x28] sm:$0xff] }
 0x3b8   : > { %2315 = vmatpush3.xpose.msk.msra.mxu1 %vm999_vm2, %v1337_v38  ;;  %v1908_v38 = vld [vmem:[%s3290_s15 + $0x20] sm:$0xff] }
 0x3b9   : > { %v2496_v39 = vpop.eup %2495  ;;  %2324 = vmatprep.subr.mxu1 %v2715_v0 }
 0x3ba   : > { %v1336_v41 = vmul.f32 %v2496_v39, %v2488_v27  ;;  %v1907_v39 = vld [vmem:[%s3290_s15 + $0x18] sm:$0xff] }
 0x3bc   : > { %2310 = vmatpush3.xpose.msk.msra.mxu0 %vm999_vm2, %v1336_v41  ;;  %v1905_v41 = vld [vmem:[%s3290_s15 + $0x8] sm:$0xff] }
 0x3bd   : > { %2319 = vmatprep.subr.mxu0 %v2715_v0 }
 0x3c1   : > { %v2498_v43 = vpop.eup %2497 }
 0x3c2   : > { %v1338_v45 = vmul.f32 %v2498_v43, %v2492_v31  ;;  %v2500_v46 = vpop.eup %2499  ;;  %v1915_v31 = vld [vmem:[%s3290_s15 + $0x58] sm:$0xff]  ;;  %v2203_v43 = vld [vmem:[%s3293_s19] ss:$0 sm:$0xff] }
 0x3c3   : > { %v1339_v48 = vmul.f32 %v2500_v46, %v2490_v29 }
 0x3d3   : > { %v983_v44 = vpop.trf.xlu0 }
 0x3d4   : > { %2312 = vmatmul.mubr.msk.f32.vlgmr.msra.gmra.mxu0 %vm999_vm2, %v983_v44 }
 0x3d5   : > { %2320 = vmatpush3.xpose.msk.msra.mxu0 %vm999_vm2, %v1338_v45  ;;  %2321 = vmatprep.mubr.msk.f32.mxu0 %vm2716_vm0, %v2715_v0 }
 0x3d6   : > { %2354 = vmatprep.subr.mxu0 %v2715_v0 }
 0x3d7   : > { %v984_v47 = vpop.trf.xlu0 }
 0x3d8   : > { %2317 = vmatmul.mubr.msk.f32.vlgmr.msra.gmra.mxu1 %vm999_vm2, %v984_v47 }
 0x3d9   : > { %2325 = vmatpush3.xpose.msk.msra.mxu1 %vm999_vm2, %v1339_v48  ;;  %2326 = vmatprep.mubr.msk.f32.mxu1 %vm2716_vm0, %v2715_v0 }
 0x3db   : > { %v985_v49 = vpop.trf.xlu0 }
 0x3dc   : > { %2322 = vmatmul.mubr.msk.f32.vlgmr.msra.gmra.mxu0 %vm999_vm2, %v985_v49 }
 0x3dd   : > { %2386 = vmatprep.mubr.msk.f32.mxu0 %vm2716_vm0, %v2715_v0  ;;  %2355 = vmatpush3.msra.mxu0 %v1919_v18 }
 0x3de   : > { %2356 = vmatprep.subr.mxu0 %v2715_v0 }
 0x3df   : > { %v986_v50 = vpop.trf.xlu0  ;;  %2357 = vmatpush3.msra.mxu0 %v1918_v19 }
 0x3e0   : > { %2327 = vmatmul.mubr.msk.f32.vlgmr.msra.gmra.mxu1 %vm999_vm2, %v986_v50  ;;  %2358 = vmatprep.subr.mxu0 %v2715_v0 }
 0x3e1   : > { %2337 = vmatprep.mubr.msk.f32.mxu1 %vm684_vm1, %v1644_v51  ;;  %2359 = vmatpush3.msra.mxu0 %v1917_v20 }
 0x3e2   : > { %2360 = vmatprep.subr.mxu0 %v2715_v0 }
 0x3e3   : > { %2361 = vmatpush3.msra.mxu0 %v1916_v21 }
 0x3e4   : > { %2362 = vmatprep.subr.mxu0 %v2715_v0 }
 0x3e5   : > { %2363 = vmatpush3.msra.mxu0 %v1915_v31 }
 0x3e6   : > { %2364 = vmatprep.subr.mxu0 %v2715_v0 }
 0x3e7   : > { %2365 = vmatpush3.msra.mxu0 %v1914_v32 }
 0x3e8   : > { %2366 = vmatprep.subr.mxu0 %v2715_v0 }
 0x3e9   : > { %2367 = vmatpush3.msra.mxu0 %v1913_v33 }
 0x3ea   : > { %2368 = vmatprep.subr.mxu0 %v2715_v0 }
 0x3eb   : > { %2369 = vmatpush3.msra.mxu0 %v1912_v34 }
 0x3ec   : > { %2370 = vmatprep.subr.mxu0 %v2715_v0 }
 0x3ed   : > { %2371 = vmatpush3.msra.mxu0 %v1911_v35 }
 0x3ee   : > { %2372 = vmatprep.subr.mxu0 %v2715_v0 }
 0x3ef   : > { %2373 = vmatpush3.msra.mxu0 %v1910_v36 }
 0x3f0   : > { %2374 = vmatprep.subr.mxu0 %v2715_v0 }
 0x3f1   : > { %2375 = vmatpush3.msra.mxu0 %v1909_v37 }
 0x3f2   : > { %2376 = vmatprep.subr.mxu0 %v2715_v0 }
 0x3f3   : > { %2377 = vmatpush3.msra.mxu0 %v1908_v38 }
 0x3f4   : > { %2378 = vmatprep.subr.mxu0 %v2715_v0 }
 0x3f5   : > { %2379 = vmatpush3.msra.mxu0 %v1907_v39 }
 0x3f6   : > { %2380 = vmatprep.subr.mxu0 %v2715_v0 }
 0x3f7   : > { %2381 = vmatpush3.msra.mxu0 %v1906_v40 }
 0x3f8   : > { %2382 = vmatprep.subr.mxu0 %v2715_v0 }
 0x3f9   : > { %2383 = vmatpush3.msra.mxu0 %v1905_v41 }
 0x3fa   : > { %2384 = vmatprep.subr.mxu0 %v2715_v0 }
 0x3fb   : > { %2385 = vmatpush3.msra.mxu0 %v1904_v42 }
 0x494   : > { %v1412_v52 = vpop.f32.mrf.mxu0 }
 0x496   : > { %v2313_v53 = vpop.f32.mrf.mxu0 }
 0x498   : > { %v1488_v54 = vpop.f32.mrf.mxu1 }
 0x49a   : > { %v2318_v55 = vpop.f32.mrf.mxu1 }
 0x49c   : > { %v1564_v56 = vpop.f32.mrf.mxu0 }
 0x49e   : > { %v2323_v57 = vpop.f32.mrf.mxu0 }
 0x4a0   : > { %v1640_v58 = vpop.f32.mrf.mxu1 }
 0x4a1   : > { %2329 = vmatprep.subr.mxu1 %v1640_v58 }
 0x4a2   : > { %2330 = vmatpush3.msra.mxu1 %v1640_v58  ;;  %v2328_v59 = vpop.f32.mrf.mxu1 }
 0x4a3   : > { %2331 = vmatprep.subr.mxu1 %v1564_v56 }
 0x4a4   : > { %2332 = vmatpush3.msra.mxu1 %v1564_v56 }
 0x4a5   : > { %2333 = vmatprep.subr.mxu1 %v1488_v54 }
 0x4a6   : > { %2334 = vmatpush3.msra.mxu1 %v1488_v54 }
 0x4a7   : > { %2335 = vmatprep.subr.mxu1 %v1412_v52 }
 0x4a8   : > { %2336 = vmatpush3.msra.mxu1 %v1412_v52 }
 0x4a9   : > { %2338 = vmatmul.mubr.msk.f32.vlgmr.msra.gmra.mxu1 %vm684_vm1, %v1645_v60  ;;  %2343 = vmatprep.subr.mxu1 %v2715_v0 }
 0x4aa   : > { %2340 = vmatprep.mubr.msk.f32.mxu1 %vm684_vm1, %v1646_v61  ;;  %2344 = vmatpush3.msra.mxu1 %v1818_v15 }
 0x4ab   : > { %2345 = vmatprep.subr.mxu1 %v2715_v0 }
 0x4ac   : > { %2346 = vmatpush3.msra.mxu1 %v1817_v16 }
 0x4ad   : > { %2341 = vmatmul.mubr.msk.f32.gmra.mxu1 %vm684_vm1, %v1647_v62  ;;  %2347 = vmatprep.subr.mxu1 %v2715_v0 }
 0x4ae   : > { %2351 = vmatprep.mubr.msk.f32.mxu1 %vm2716_vm0, %v2715_v0 }
 0x569   : > { %v2339_v63 = vpop.f32.mrf.mxu1 }
 0x56b   : > { %v1726_v1 = vpop.f32.mrf.mxu1 }
 0x56c   : > { %1745 = vxpose.xlu1.b32.start [1/4] (short) (narrow) %v1726_v1, 8 }
 0x56d   : > { %v2342_v3 = vpop.f32.mrf.mxu1 }
 0x56f   : > { %v1736_v4 = vpop.f32.mrf.mxu1 }
 0x570   : > { %1746 = vxpose.xlu1.b32.cont [2/4] (short) (narrow) %v2339_v63, 8 }
 0x574   : > { %1747 = vxpose.xlu1.b32.cont [3/4] (short) (narrow) %v1736_v4, 8 }
 0x578   : > { %1748 = vxpose.xlu1.b32.end [4/4] (short) (narrow) %v2342_v3, 8 }
 0x5e8   : > { %v1761_v6 = vpop.trf.xlu1 }
 0x5e9   : > { %v1777_v7 = vadd.f32 %v1761_v6, %v2975_v2  ;;  %v1816_v2 = vld [vmem:[#allocation8 + $0x8] sm:$0xff] }
 0x5ea   : > { %2348 = vmatpush3.msra.mxu1 %v1816_v2 }
 0x5eb   : > { %v3105_v8 = vadd.f32 %v2200_v5, %v1777_v7  ;;  %2349 = vmatprep.subr.mxu1 %v2715_v0  ;;  %v2205_v0 = vld [vmem:[%s3295_s13] ss:$0 sm:$0xff] }
 0x5ec   : > { %2350 = vmatpush3.msra.mxu1 %v1815_v17 }
 0x5ed   : > { %v1786_v9 = vsel %vm684_vm1, %v3105_v8, 0.0 }
 0x5ee   : > { %1787 = vadd.xlane.f32.xlu0 %v1786_v9 }
 0x677   : > { %v1788_v10 = vpop.xlane.xlu0 %1787 }
 0x678   : > { %v1789_v11 = vmul.f32 0.03125, %v1788_v10 }
 0x67a   : > { %v1790_v12 = vsub.f32 %v3105_v8, %v1789_v11 }
 0x67c   : > { %v1791_v13 = vmul.f32 %v1790_v12, %v1790_v12 }
 0x67e   : > { %v1792_v14 = vsel %vm684_vm1, %v1791_v13, 0.0 }
 0x67f   : > { %1793 = vadd.xlane.f32.xlu1 %v1792_v14 }
 0x708   : > { %v1794_v22 = vpop.xlane.xlu1 %1793 }
 0x709   : > { %v1795_v23 = vmul.f32 0.03125, %v1794_v22 }
 0x70b   : > { %v1796_v24 = vadd.f32 1e-06, %v1795_v23 }
 0x70d   : > { %2501 = vrsqrt.f32 %v1796_v24 }
 0x71a   : > { %v2502_v25 = vpop.eup %2501 }
 0x71b   : > { %v1798_v27 = vmul.f32 %v2502_v25, %v1790_v12 }
 0x71d   : > { %v1806_v29 = vmul.f32 %v2201_v26, %v1798_v27 }
 0x71f   : > { %v1814_v30 = vadd.f32 %v2202_v28, %v1806_v29 }
 0x721   : > { %2352 = vmatmul.mubr.msk.f32.vlgmr.msra.gmra.mxu1 %vm684_vm1, %v1814_v30 }
 0x7e1   : > { %v1895_v44 = vpop.f32.mrf.mxu1 }
 0x7e2   : > { %v1896_v45 = vadd.f32 %v2203_v43, %v1895_v44 }
 0x7e3   : > { %v2353_v46 = vpop.f32.mrf.mxu1 }
 0x7e4   : > { %v1900_v47 = vmul.f32 0.70710677, %v1896_v45  ;;  %v1899_v49 = vmul.f32 0.5, %v1896_v45 }
 0x7e6   : > { %2503 = verf.f32 %v1900_v47 }
 0x7f3   : > { %v2504_v48 = vpop.eup %2503 }
 0x7f4   : > { %v1902_v50 = vadd.f32 1.0, %v2504_v48 }
 0x7f6   : > { %v1903_v51 = vmul.f32 %v1902_v50, %v1899_v49 }
 0x7f8   : > { %2387 = vmatmul.mubr.f32.vlgmr.msra.gmra.mxu0 %v1903_v51 }
 0x8b8   : > { %v1993_v52 = vpop.f32.mrf.mxu0 }
 0x8b9   : > { %v1994_v53 = vadd.f32 %v2205_v0, %v1993_v52 }
 0x8ba   : > { %v2388_v54 = vpop.f32.mrf.mxu0 }
 0x8bb   : > { %v1997_v55 = vadd.f32 %v1994_v53, %v3105_v8 }
 0x8bd   : > { %1998 = vst.msk [vmem:[%s669_s20] sm:$0xff] %vm684_vm1, %v1997_v55 }
 0x8be   : > { %2626 = shalt.err (!%p2623_p2)
}
 0x8bf   : > { %s2627_s19 = scalar_lea.hbm %s2012_s0, 128  ;;  %s2631_s12 = scalar_lea.hbm %s3296_s21, 256 }
 0x8c0   : > { %p2628_p6 = scmp.ne.s32.totalorder %s2012_s0, %s2627_s19  ;;  %p2632_p0 = scmp.lt.s32.totalorder %s2012_s0, %s3296_s21 }
 0x8c1   : > { %p2633_p12 = scmp.lt.s32.totalorder %s2631_s12, %s2627_s19 }
 0x8c2   : > { %p2629_p8 = pnand %p2628_p6, %p2899_p9 }
 0x8c3   : > { %p2634_p4 = por %p2633_p12, %p2632_p0 }
 0x8c4   : > { %p2630_p11 = pneg %p2629_p8 }
 0x8c6   : > { %p2635_p3 = pnand %p2634_p4, %p2630_p11 }
 0x8c8   : > { %2638 = shalt.err (!%p2635_p3)
}
 0x8c9   : > { %2401 = dma.vmem_to_hbm [thread:$0]  (%p2899_p9), %s2015_s28, 128, %s2012_s0, %s2000_s16  }
 0x8ca PF: > { %s3297_s20 = sld [smem:[#allocation16_spill]]  ;;  %p3300_p13 = scmp.ge.s32.totalorder %s2705_s29, 2 }
 0x8cb   : > { %s3298_s1 = sld [smem:[#allocation18_spill]] }
 0x8d0   : > { %s2026_s18 = sand.u32 1, %s3297_s20  }
 0x8d1   : > { %p3299_p7 = scmp.ne.s32.totalorder %s3298_s1, 0  ;;  %s2027_s23 = scalar_lea.sflag [#allocation4], %s2026_s18 }
 0x8d3   : > { %p2418_p5 = pnand %p3300_p13, %p3299_p7 }
 0x8d5   : > { %p2419_p10 = pneg %p2418_p5 }
 0x8d7   : > { %2680 = dma.done.wait (%p2419_p10), %s2027_s23, 128  }
 0x8d8   : > { %2682 = vsyncadd (%p2419_p10), %s2027_s23, 4294967168  ;;  %s37_s29 = sadd.s32 1, %s2705_s29   ;;  %s3301_s27 = sld [smem:[#allocation17_spill]] }
 0x8d9   : > { %p34_p1 = scmp.ge.s32.totalorder %s37_s29, 4   ;;  %s3302_s28 = sld [smem:[#allocation19_spill]] }
 0x8da   : > { %s3303_s24 = smov %s2689_s25  ;;  %s3304_s25 = smov %s2693_s26 }
 0x8db   : > { %s3305_s26 = smov %s2908_s17  ;;  %36 = sbr.rel (!%p34_p1) target bundleno = 20 (0x14), region = 157 }
 0x8e0   :  { %2032 = vsyncpa [#allocation3], 1 }
 0x8e1   :  { %2034 = vsyncpa [#allocation3 + $0x1], 1 }
 0x8e2   :  { %2035 = vsyncpa [#allocation6], 1 }
 0x8e3   :  { %2037 = vsyncpa [#allocation6 + $0x1], 1 }
 0x8e4   :  { %2038 = vsyncpa [#allocation9], 1 }
 0x8e5   :  { %2039 = vsyncpa [#allocation4], 1 }
 0x8e6   :  { %2041 = vsyncpa [#allocation4 + $0x1], 1 }

</bundles_post_ra>
